<compile_context>
chip_gen: v7x
topology: tpu7x:2x2x1
jax: 0.10.0
libtpu: 0.0.40
codegen_flags: <defaults>
</compile_context>

<pallas_src>
import jax
import jax.numpy as jnp
from jax.experimental import pallas as pl
from jax.experimental.pallas import tpu as pltpu


def base_fwd_kernel(lens_ref, ctx_ref, w1_ref, w2_ref, nid_ref, inv_ref,
                    scores_ref):
    # lens_ref   : (TB, 1)      int32   context lengths
    # ctx_ref    : (TB, L, d)   bf16    context token embeddings
    # w1_ref     : (d, dh)      bf16    SelfAttEncoder projection
    # w2_ref     : (1, dh)      f32     SelfAttEncoder scoring vector (row)
    # nid_ref    : (TB, d, TP)  bf16    candidate item embeddings (P on lanes)
    # inv_ref    : (TB, TP)     f32     precomputed per-item inverse norms
    # scores_ref : (TB, TP)     f32
    tb, L, d = ctx_ref.shape
    tp = nid_ref.shape[2]
    dh = w1_ref.shape[1]

    ctx = ctx_ref[...]                                            # (TB, L, d) bf16

    # Validity mask over context positions, lane-dense (TB, L).
    pos = jax.lax.broadcasted_iota(jnp.int32, (tb, L), 1)
    valid = pos < lens_ref[...]                                   # (TB, L) bool

    # ---- SelfAttEncoder(d, d/2): masked additive self-attention pooling ----
    # bf16 x bf16 -> f32 MXU matmul; no full-block f32 upcast of ctx.
    h = jnp.tanh(jnp.dot(ctx.reshape(tb * L, d), w1_ref[...],
                         preferred_element_type=jnp.float32))     # (TB*L, dh) f32
    # Logit projection on the VPU: broadcast-multiply by w2 row + lane reduce.
    logits = jnp.sum(h.reshape(tb, L, dh) * w2_ref[...][None], axis=-1)  # (TB, L)

    logits = jnp.where(valid, logits, jnp.float32(-1e30))
    logits = logits - jnp.max(logits, axis=-1, keepdims=True)
    e = jnp.where(valid, jnp.exp(logits), jnp.float32(0.0))       # (TB, L)
    denom = jnp.sum(e, axis=-1, keepdims=True) + jnp.float32(1e-9)
    attn = e * pl.reciprocal(denom, approx=True)                  # (TB, L) f32

    # Pooled context; f32 promotion happens inside the fused multiply
    # (no separate full-block cast pass).
    c = jnp.sum(attn[..., None] * ctx, axis=1)                    # (TB, d) f32

    # ---- f_sim = dist_cos: cosine similarity c vs. each item embedding ----
    # Only TB rsqrt per grid step (item inverse norms precomputed per vocab id).
    c_sq = jnp.sum(c * c, axis=-1, keepdims=True)                 # (TB, 1)
    inv_c = jax.lax.rsqrt(jnp.maximum(c_sq, jnp.float32(1e-16)))  # (TB, 1)

    dots = jnp.einsum('bqd,bdp->bqp',
                      c[:, None, :].astype(nid_ref.dtype), nid_ref[...],
                      preferred_element_type=jnp.float32).reshape(tb, tp)

    scores_ref[...] = dots * inv_c * inv_ref[...]


def base_forward(ctx_tokens, ctx_lens, nids, emb_v, w1, w2, *, tb=16, tp=512):
    """ctx_tokens [n, L] int32, ctx_lens [n] int32, nids [n, P] int32.
    Returns scores [n, P] float32."""
    n, L = ctx_tokens.shape
    _, P = nids.shape
    d = emb_v.shape[1]
    dh = w1.shape[1]

    # Batch tile (multiple of 8 sublanes) and candidate tile (multiple of 128
    # lanes -> dense stores; bounded VMEM per step, fits v7x's 64 MiB).
    tb = max(8, (tb // 8) * 8)
    p128 = pl.cdiv(P, 128) * 128
    tp = max(128, min((tp // 128) * 128, p128))
    n_pad = pl.cdiv(n, tb) * tb
    P_pad = pl.cdiv(P, tp) * tp

    # Pad batch (zeros: lens=0, ids=0 -> scores 0, sliced off) and candidates.
    ctx_tokens_p = jnp.zeros((n_pad, L), jnp.int32).at[:n].set(ctx_tokens)
    nids_p = jnp.zeros((n_pad, P_pad), jnp.int32).at[:n, :P].set(nids)
    lens_p = jnp.zeros((n_pad, 1), jnp.int32).at[:n, 0].set(ctx_lens)

    # Glue: embedding gathers (padding_idx=0 row is zero). bf16 halves HBM
    # traffic; MXU accumulates in f32, VPU math upcasts in-kernel.
    emb_bf = emb_v.astype(jnp.bfloat16)
    ctx_emb = jnp.take(emb_bf, ctx_tokens_p, axis=0)              # (n_pad, L, d)

    # Per-vocab inverse norms: O(n_v) precompute + id gather instead of
    # re-reading the whole gathered (n, P, d) tensor.
    emb_sq = jnp.sum(jnp.square(emb_bf.astype(jnp.float32)), axis=-1)    # (n_v,)
    inv_norm_v = jax.lax.rsqrt(jnp.maximum(emb_sq, jnp.float32(1e-16)))  # (n_v,)
    nid_inv = jnp.take(inv_norm_v, nids_p, axis=0)                # (n_pad, P_pad) f32

    # Candidate embeddings with P on the lane axis (lane-dense when d < 128;
    # layout is also fine for d >= 128).
    nid_emb_t = jnp.swapaxes(jnp.take(emb_bf, nids_p, axis=0), 1, 2)  # (n_pad, d, P_pad)

    w1_bf = w1.astype(jnp.bfloat16)
    w2_row = w2.reshape(1, dh).astype(jnp.float32)

    scores = pl.pallas_call(
        base_fwd_kernel,
        out_shape=jax.ShapeDtypeStruct((n_pad, P_pad), jnp.float32),
        grid_spec=pltpu.PrefetchScalarGridSpec(
            num_scalar_prefetch=0,
            grid=(n_pad // tb, P_pad // tp),
            in_specs=[
                pl.BlockSpec((tb, 1), lambda i, p: (i, 0)),          # lens
                pl.BlockSpec((tb, L, d), lambda i, p: (i, 0, 0)),    # ctx_emb
                pl.BlockSpec((d, dh), lambda i, p: (0, 0)),          # W1 (const)
                pl.BlockSpec((1, dh), lambda i, p: (0, 0)),          # w2 (const)
                pl.BlockSpec((tb, d, tp), lambda i, p: (i, 0, p)),   # nid_emb_t
                pl.BlockSpec((tb, tp), lambda i, p: (i, p)),         # nid_inv
            ],
            out_specs=pl.BlockSpec((tb, tp), lambda i, p: (i, p)),
        ),
        compiler_params=pltpu.CompilerParams(
            dimension_semantics=("parallel", "parallel"),
            vmem_limit_bytes=32 * 1024 * 1024),
    )(lens_p, ctx_emb, w1_bf, w2_row, nid_emb_t, nid_inv)
    return scores[:n, :P]


def base_forward_ref(ctx_tokens, ctx_lens, nids, emb_v, w1, w2):
    """Pure-JAX reference (same bf16-rounded embeddings)."""
    emb = emb_v.astype(jnp.bfloat16).astype(jnp.float32)
    ctx = jnp.take(emb, ctx_tokens, axis=0)                        # (n, L, d)
    items = jnp.take(emb, nids, axis=0)                            # (n, P, d)
    L = ctx.shape[1]
    mask = (jnp.arange(L)[None, :] < ctx_lens[:, None]).astype(jnp.float32)
    h = jnp.tanh(jnp.einsum('nld,dh->nlh', ctx, w1))
    a = jnp.einsum('nlh,h->nl', h, w2[:, 0])
    a = jnp.where(mask > 0, a, -1e30)
    a = a - jnp.max(a, axis=-1, keepdims=True)
    e = jnp.exp(a) * mask
    attn = e / (jnp.sum(e, axis=-1, keepdims=True) + 1e-9)
    c = jnp.einsum('nl,nld->nd', attn, ctx)
    dots = jnp.einsum('nd,npd->np', c, items)
    c_norm = jnp.sqrt(jnp.sum(c * c, axis=-1, keepdims=True))
    i_norm = jnp.sqrt(jnp.sum(items * items, axis=-1))
    return dots / jnp.maximum(c_norm * i_norm, 1e-8)


if __name__ == "__main__":
    # Small shapes consistent with the module: batch n=2, ctx len L=8,
    # pad_len P=8, vocab n_v=64, d=32 (so SelfAttEncoder hidden = d//2 = 16).
    n, L, P = 2, 8, 8
    n_v, d = 64, 32
    dh = d // 2

    key = jax.random.PRNGKey(0)
    k_emb, k_w1, k_w2, k_ctx, k_nid, k_len = jax.random.split(key, 6)

    # nn.Embedding(n_v, d, padding_idx=0): row 0 zeroed.
    emb_v = jax.random.normal(k_emb, (n_v, d), jnp.float32) * 0.1
    emb_v = emb_v.at[0].set(0.0)
    # SelfAttEncoder params: W1 [d, d//2], w2 [d//2, 1].
    w1 = jax.random.normal(k_w1, (d, dh), jnp.float32) * (1.0 / jnp.sqrt(d))
    w2 = jax.random.normal(k_w2, (dh, 1), jnp.float32) * (1.0 / jnp.sqrt(dh))

    # Context token ids (1..n_v-1 real, 0 = pad), lengths, candidate item ids.
    ctx_lens = jax.random.randint(k_len, (n,), 3, L + 1, dtype=jnp.int32)
    ctx_tokens = jax.random.randint(k_ctx, (n, L), 1, n_v, dtype=jnp.int32)
    ctx_tokens = jnp.where(jnp.arange(L)[None, :] < ctx_lens[:, None],
                           ctx_tokens, 0)
    nids = jax.random.randint(k_nid, (n, P), 0, n_v, dtype=jnp.int32)

    scores = base_forward(ctx_tokens, ctx_lens, nids, emb_v, w1, w2)
    jax.block_until_ready(scores)
    assert scores.shape == (n, P) and scores.dtype == jnp.float32
    assert bool(jnp.all(jnp.isfinite(scores)))

    ref = base_forward_ref(ctx_tokens, ctx_lens, nids, emb_v, w1, w2)
    assert bool(jnp.allclose(scores, ref, atol=5e-2, rtol=5e-2))

    print("KERNEL_OK")
</pallas_src>

<mosaic_0001>
module attributes {stable_mosaic.version = 11 : i64} {
  func.func @base_fwd_kernel(%arg0: i32, %arg1: i32, %arg2: memref<16x1xi32, #tpu.memory_space<vmem>>, %arg3: memref<16x8x32xbf16, #tpu.memory_space<vmem>>, %arg4: memref<32x16xbf16, #tpu.memory_space<vmem>>, %arg5: memref<1x16xf32, #tpu.memory_space<vmem>>, %arg6: memref<16x32x128xbf16, #tpu.memory_space<vmem>>, %arg7: memref<16x128xf32, #tpu.memory_space<vmem>>, %arg8: memref<16x128xf32, #tpu.memory_space<vmem>>) attributes {dimension_semantics = [#tpu.dimension_semantics<parallel>, #tpu.dimension_semantics<parallel>], iteration_bounds = array<i64: 1, 1>, scalar_prefetch = 0 : i64, scratch_operands = 0 : i64, tpu.core_type = #tpu.core_type<tc>, window_params = [{transform_indices = @transform_0, window_bounds = array<i64: 16, 1>}, {transform_indices = @transform_1, window_bounds = array<i64: 16, 8, 32>}, {pipeline_mode = #tpu.pipeline_mode<synchronous>, transform_indices = @transform_2, window_bounds = array<i64: 32, 16>}, {pipeline_mode = #tpu.pipeline_mode<synchronous>, transform_indices = @transform_3, window_bounds = array<i64: 1, 16>}, {transform_indices = @transform_4, window_bounds = array<i64: 16, 32, 128>}, {transform_indices = @transform_5, window_bounds = array<i64: 16, 128>}, {transform_indices = @transform_6, window_bounds = array<i64: 16, 128>}]} {
    %c0 = arith.constant 0 : index
    %c0_0 = arith.constant 0 : index
    %c0_1 = arith.constant 0 : index
    %0 = vector.load %arg3[%c0, %c0_0, %c0_1] : memref<16x8x32xbf16, #tpu.memory_space<vmem>>, vector<16x8x32xbf16>
    %1 = tpu.iota {dimensions = array<i32: 1>} : vector<16x8xi32>
    %c0_2 = arith.constant 0 : index
    %c0_3 = arith.constant 0 : index
    %2 = vector.load %arg2[%c0_2, %c0_3] : memref<16x1xi32, #tpu.memory_space<vmem>>, vector<16x1xi32>
    %3 = vector.broadcast %2 : vector<16x1xi32> to vector<16x8xi32>
    %4 = arith.cmpi slt, %1, %3 : vector<16x8xi32>
    %5 = vector.shape_cast %0 : vector<16x8x32xbf16> to vector<128x32xbf16>
    %c0_4 = arith.constant 0 : index
    %c0_5 = arith.constant 0 : index
    %6 = vector.load %arg4[%c0_4, %c0_5] : memref<32x16xbf16, #tpu.memory_space<vmem>>, vector<32x16xbf16>
    %cst = arith.constant dense<0.000000e+00> : vector<128x16xf32>
    %7 = tpu.matmul %5, %6, %cst {dimension_numbers = #tpu.dot_dimension_numbers<[1], [0], [0], [1], [0, 0, 1, 1], [], []>} : vector<128x32xbf16>, vector<32x16xbf16>, vector<128x16xf32> -> vector<128x16xf32>
    %8 = math.tanh %7 : vector<128x16xf32>
    %9 = vector.shape_cast %8 : vector<128x16xf32> to vector<16x8x16xf32>
    %c0_6 = arith.constant 0 : index
    %c0_7 = arith.constant 0 : index
    %10 = vector.load %arg5[%c0_6, %c0_7] : memref<1x16xf32, #tpu.memory_space<vmem>>, vector<1x16xf32>
    %11 = vector.shape_cast %10 : vector<1x16xf32> to vector<1x1x16xf32>
    %12 = vector.broadcast %11 : vector<1x1x16xf32> to vector<16x8x16xf32>
    %13 = arith.mulf %9, %12 : vector<16x8x16xf32>
    %cst_8 = arith.constant dense<0.000000e+00> : vector<16x8xf32>
    %14 = vector.multi_reduction <add>, %13, %cst_8 [2] : vector<16x8x16xf32> to vector<16x8xf32>
    %cst_9 = arith.constant -1.000000e+30 : f32
    %15 = vector.broadcast %cst_9 : f32 to vector<16x8xf32>
    %16 = arith.select %4, %14, %15 : vector<16x8xi1>, vector<16x8xf32>
    %cst_10 = arith.constant dense<0xFF800000> : vector<16xf32>
    %17 = vector.multi_reduction <maximumf>, %16, %cst_10 [1] : vector<16x8xf32> to vector<16xf32>
    %18 = vector.shape_cast %17 : vector<16xf32> to vector<16x1xf32>
    %19 = vector.broadcast %18 : vector<16x1xf32> to vector<16x8xf32>
    %20 = arith.subf %16, %19 : vector<16x8xf32>
    %21 = math.exp %20 : vector<16x8xf32>
    %cst_11 = arith.constant 0.000000e+00 : f32
    %22 = vector.broadcast %cst_11 : f32 to vector<16x8xf32>
    %23 = arith.select %4, %21, %22 : vector<16x8xi1>, vector<16x8xf32>
    %cst_12 = arith.constant dense<0.000000e+00> : vector<16xf32>
    %24 = vector.multi_reduction <add>, %23, %cst_12 [1] : vector<16x8xf32> to vector<16xf32>
    %25 = vector.shape_cast %24 : vector<16xf32> to vector<16x1xf32>
    %cst_13 = arith.constant 9.99999971E-10 : f32
    %26 = vector.broadcast %cst_13 : f32 to vector<16x1xf32>
    %27 = arith.addf %25, %26 : vector<16x1xf32>
    %28 = tpu.reciprocal %27 {approx = true} : vector<16x1xf32> -> vector<16x1xf32>
    %29 = vector.broadcast %28 : vector<16x1xf32> to vector<16x8xf32>
    %30 = arith.mulf %23, %29 : vector<16x8xf32>
    %31 = vector.shape_cast %30 : vector<16x8xf32> to vector<16x8x1xf32>
    %32 = arith.extf %0 : vector<16x8x32xbf16> to vector<16x8x32xf32>
    %33 = vector.broadcast %31 : vector<16x8x1xf32> to vector<16x8x32xf32>
    %34 = arith.mulf %33, %32 : vector<16x8x32xf32>
    %cst_14 = arith.constant dense<0.000000e+00> : vector<16x32xf32>
    %35 = vector.multi_reduction <add>, %34, %cst_14 [1] : vector<16x8x32xf32> to vector<16x32xf32>
    %36 = arith.mulf %35, %35 : vector<16x32xf32>
    %cst_15 = arith.constant dense<0.000000e+00> : vector<16xf32>
    %37 = vector.multi_reduction <add>, %36, %cst_15 [1] : vector<16x32xf32> to vector<16xf32>
    %38 = vector.shape_cast %37 : vector<16xf32> to vector<16x1xf32>
    %cst_16 = arith.constant 1.000000e-16 : f32
    %39 = vector.broadcast %cst_16 : f32 to vector<16x1xf32>
    %40 = arith.maximumf %38, %39 : vector<16x1xf32>
    %41 = math.rsqrt %40 : vector<16x1xf32>
    %42 = vector.shape_cast %35 : vector<16x32xf32> to vector<16x1x32xf32>
    %43 = arith.truncf %42 : vector<16x1x32xf32> to vector<16x1x32xbf16>
    %c0_17 = arith.constant 0 : index
    %c0_18 = arith.constant 0 : index
    %c0_19 = arith.constant 0 : index
    %44 = vector.load %arg6[%c0_17, %c0_18, %c0_19] : memref<16x32x128xbf16, #tpu.memory_space<vmem>>, vector<16x32x128xbf16>
    "tpu.trace_start"() <{level = 10 : i32, message = "bqd,bdp->bqp"}> : () -> ()
    %cst_20 = arith.constant dense<0.000000e+00> : vector<16x1x128xf32>
    %45 = tpu.matmul %43, %44, %cst_20 {dimension_numbers = #tpu.dot_dimension_numbers<[2], [1], [1], [2], [0, 0, 0, 1, 1, 2], [0], [0]>} : vector<16x1x32xbf16>, vector<16x32x128xbf16>, vector<16x1x128xf32> -> vector<16x1x128xf32>
    "tpu.trace_stop"() : () -> ()
    %46 = vector.shape_cast %45 : vector<16x1x128xf32> to vector<16x128xf32>
    %47 = vector.broadcast %41 : vector<16x1xf32> to vector<16x128xf32>
    %48 = arith.mulf %46, %47 : vector<16x128xf32>
    %c0_21 = arith.constant 0 : index
    %c0_22 = arith.constant 0 : index
    %49 = vector.load %arg7[%c0_21, %c0_22] : memref<16x128xf32, #tpu.memory_space<vmem>>, vector<16x128xf32>
    %50 = arith.mulf %48, %49 : vector<16x128xf32>
    %c0_23 = arith.constant 0 : index
    %c0_24 = arith.constant 0 : index
    %51 = vector.load %arg8[%c0_23, %c0_24] : memref<16x128xf32, #tpu.memory_space<vmem>>, vector<16x128xf32>
    tpu.vector_store %arg8[%c0_23, %c0_24], %50 {strides = array<i32>} : memref<16x128xf32, #tpu.memory_space<vmem>>, vector<16x128xf32>,
    return
  }
  func.func @transform_0(%arg0: i32, %arg1: i32) -> (i32, i32) {
    %c0_i32 = arith.constant 0 : i32
    %c0_i32_0 = arith.constant 0 : i32
    return %arg0, %c0_i32 : i32, i32
  }
  func.func @transform_1(%arg0: i32, %arg1: i32) -> (i32, i32, i32) {
    %c0_i32 = arith.constant 0 : i32
    %c0_i32_0 = arith.constant 0 : i32
    %c0_i32_1 = arith.constant 0 : i32
    return %arg0, %c0_i32, %c0_i32_0 : i32, i32, i32
  }
  func.func @transform_2(%arg0: i32, %arg1: i32) -> (i32, i32) {
    %c0_i32 = arith.constant 0 : i32
    %c0_i32_0 = arith.constant 0 : i32
    %c0_i32_1 = arith.constant 0 : i32
    return %c0_i32, %c0_i32_0 : i32, i32
  }
  func.func @transform_3(%arg0: i32, %arg1: i32) -> (i32, i32) {
    %c0_i32 = arith.constant 0 : i32
    %c0_i32_0 = arith.constant 0 : i32
    %c0_i32_1 = arith.constant 0 : i32
    return %c0_i32, %c0_i32_0 : i32, i32
  }
  func.func @transform_4(%arg0: i32, %arg1: i32) -> (i32, i32, i32) {
    %c0_i32 = arith.constant 0 : i32
    %c0_i32_0 = arith.constant 0 : i32
    return %arg0, %c0_i32, %arg1 : i32, i32, i32
  }
  func.func @transform_5(%arg0: i32, %arg1: i32) -> (i32, i32) {
    %c0_i32 = arith.constant 0 : i32
    return %arg0, %arg1 : i32, i32
  }
  func.func @transform_6(%arg0: i32, %arg1: i32) -> (i32, i32) {
    %c0_i32 = arith.constant 0 : i32
    return %arg0, %arg1 : i32, i32
  }
}

</mosaic_0001>

<bundles_post_ra>
// kernel: tpu_custom_call.1
= control target key start
LH: loop header
LB: loop body
LE: loop exit
PB: predicated region body
PF: predicated region fallthrough
CT: control target
= control target key end

     0   :  { %11 = vsyncpa [#allocation3], 0  ;;  %s2802_s0 = inlined_call_operand.vmem [shape: s32[16,1], index: 0, kind: input, shape index: {}]   ;;  %s2803_s1 = inlined_call_operand.hbm [shape: bf16[16,8,32], index: 1, kind: input, shape index: {}]   ;;  %s2804_s2 = inlined_call_operand.vmem [shape: bf16[32,16], index: 2, kind: input, shape index: {}]   ;;  %s2805_s3 = inlined_call_operand.vmem [shape: f32[1,16], index: 3, kind: input, shape index: {}]   ;;  %s2806_s4 = inlined_call_operand.hbm [shape: bf16[16,32,128], index: 4, kind: input, shape index: {}]   ;;  %s2807_s5 = inlined_call_operand.vmem [shape: f32[16,128], index: 5, kind: input, shape index: {}]   ;;  %s2808_s6 = inlined_call_operand.hbm [shape: f32[16,128], index: 6, kind: output, shape index: {}]  }
   0x1   :  { %12 = vsyncpa [#allocation6], 0 }
   0x2   :  { %13 = vsyncpa [#allocation4], 0  ;;  %s2368_s21 = smov [#allocation2]   ;;  %s2296_s25 = scalar_lea.hbm %s2803_s1, 1024 }
   0x3   :  { %s21_s22 = sshll.u32 %s2368_s21, 4  ;;  %p2297_p0 = scmp.ne.s32.totalorder %s2803_s1, %s2296_s25  ;;  %s22_s22 = int_to_ptr.vmem [resolvable:$true] %s21_s22 }
   0x4   :  { %p2300_p1 = scmp.lt.u32.totalorder %s2296_s25, %s2803_s1 }
   0x6   :  { %p2302_p2 = pnand %p2300_p1, %p2297_p0 }
   0x8   :  { %2305 = shalt.err (!%p2302_p2)
}
   0x9   :  { %s2306_s30 = scalar_lea.vmem %s22_s22, 1024  ;;  %p2311_p4 = scmp.lt.s32.totalorder %s22_s22, %s22_s22 }
   0xa   :  { %p2307_p3 = scmp.ne.s32.totalorder %s22_s22, %s2306_s30  ;;  %p2312_p5 = scmp.lt.s32.totalorder %s2306_s30, %s2306_s30 }
   0xc   :  { %p2313_p6 = por %p2312_p5, %p2311_p4 }
   0xe   :  { %p2314_p7 = pnand %p2313_p6, %p2307_p3 }
  0x10   :  { %2317 = shalt.err (!%p2314_p7)
}
  0x11   :  { %s2369_s7 = smov 64   ;;  %s2370_s8 = smov 4  }
  0x12   :  { %27 = dma.hbm_to_vmem [thread:$0]  %s2803_s1, 1024, %s22_s22, [#allocation3], %s2369_s7, %s2369_s7, %s2370_s8  }
  0x13   :  { %s2371_s11 = smov [#allocation5]   ;;  %s2318_s15 = scalar_lea.hbm %s2806_s4, 4096 }
  0x14   :  { %s37_s12 = sshll.u32 %s2371_s11, 4  ;;  %p2319_p8 = scmp.ne.s32.totalorder %s2806_s4, %s2318_s15  ;;  %s38_s12 = int_to_ptr.vmem [resolvable:$true] %s37_s12 }
  0x15   :  { %p2322_p9 = scmp.lt.u32.totalorder %s2318_s15, %s2806_s4 }
  0x17   :  { %p2324_p10 = pnand %p2322_p9, %p2319_p8 }
  0x19   :  { %2327 = shalt.err (!%p2324_p10)
}
  0x1a   :  { %s2328_s20 = scalar_lea.vmem %s38_s12, 4096  ;;  %p2333_p12 = scmp.lt.s32.totalorder %s38_s12, %s38_s12 }
  0x1b   :  { %p2329_p11 = scmp.ne.s32.totalorder %s38_s12, %s2328_s20  ;;  %p2334_p13 = scmp.lt.s32.totalorder %s2328_s20, %s2328_s20 }
  0x1d   :  { %p2335_p0 = por %p2334_p13, %p2333_p12 }
  0x1f   :  { %p2336_p1 = pnand %p2335_p0, %p2329_p11 }
  0x21   :  { %2339 = shalt.err (!%p2336_p1)
}
  0x22   :  { %43 = dma.hbm_to_vmem [thread:$0]  %s2806_s4, 4096, %s38_s12, [#allocation6], %s2369_s7, %s2369_s7, %s2370_s8  }
  0x23   :  { %2362 = dma.done.wait [#allocation3], 1024  }
  0x24   :  { %2363 = vsyncadd [#allocation3], 4294966272 }
  0x25   :  { %2364 = dma.done.wait [#allocation6], 4096  }
  0x26   :  { %2365 = vsyncadd [#allocation6], 4294963200  ;;  %v2202_v0 = vld [vmem:[%s2804_s2] sm:$0xff]   ;;  %v2203_v1 = vld [vmem:[%s2804_s2 + $0x8] sm:$0xff]   ;;  %vm137_vm0 = vcmask 261120   ;;  %v2372_v10 = vmov 0  }
  0x27   :  { %2042 = vmatprep.subr.bf16.mxu0 %v2202_v0  ;;  %v2443_v2 = vld [vmem:[#allocation2] sm:$0xff]   ;;  %v2445_v3 = vld [vmem:[#allocation2 + $0x8] sm:$0xff]   ;;  %v2447_v4 = vld [vmem:[#allocation2 + $0x10] sm:$0xff]   ;;  %2200 = vset.pattern.permute.xlu0 %v2372_v10  ;;  %vm298_vm1 = vcmask 130048   ;;  %vm427_vm2 = vcmask 1041409   ;;  %vm429_vm3 = vcmask 1042434  }
  0x28   :  { %2043 = vmatpush3.bf16.msra.mxu0 %v2202_v0  ;;  %2046 = vmatprep.mubr.msk.bf16.mxu0 %vm137_vm0, %v2443_v2  ;;  %v2451_v5 = vld [vmem:[#allocation2 + $0x18] sm:$0xff]   ;;  %v2455_v6 = vld [vmem:[#allocation2 + $0x20] sm:$0xff]   ;;  %v2459_v7 = vld [vmem:[#allocation2 + $0x28] sm:$0xff]   ;;  %vm431_vm4 = vcmask 1043459   ;;  %vm433_vm5 = vcmask 1044484   ;;  %vm435_vm6 = vcmask 1045509  }
  0x29   :  { %2044 = vmatprep.subr.bf16.mxu0 %v2203_v1  ;;  %v2463_v8 = vld [vmem:[#allocation2 + $0x30] sm:$0xff]   ;;  %v2471_v9 = vld [vmem:[#allocation2 + $0x38] sm:$0xff]   ;;  %2201 = vset.pattern.permute.xlu1 %v2372_v10  ;;  %vm437_vm7 = vcmask 1046534   ;;  %vm439_vm8 = vcmask 1047559   ;;  %vm452_vm9 = vcmask 64512   ;;  %vm2374_vm12 = vmmov 0  }
  0x2a   :  { %v2478_v17 = vld [vmem:[%s2805_s3] ss:$0 sm:$0xff] }
  0x2c   :  { %2045 = vmatpush3.bf16.msra.mxu0 %v2203_v1 }
  0x2f   :  { %2047 = vmatmul.mubr.msk.bf16.vlgmr.msra.gmra.mrb[0].mxu0 %vm137_vm0, %v2445_v3 }
  0x30   :  { %2050 = vmatprep.mubr.msk.bf16.mxu0 %vm137_vm0, %v2447_v4 }
  0x37   :  { %2051 = vmatmul.mubr.msk.bf16.gmra.mrb[4].mxu0 %vm137_vm0, %v2451_v5 }
  0x38   :  { %2054 = vmatprep.mubr.msk.bf16.mxu0 %vm137_vm0, %v2455_v6 }
  0x3f   :  { %2055 = vmatmul.mubr.msk.bf16.gmra.mrb[8].mxu0 %vm137_vm0, %v2459_v7 }
  0x40   :  { %2058 = vmatprep.mubr.msk.bf16.mxu0 %vm137_vm0, %v2463_v8 }
  0x47   :  { %2059 = vmatmul.mubr.msk.bf16.gmra.mrb[12].mxu0 %vm137_vm0, %v2471_v9 }
 0x102   :  { %v2048_v11 = vpop.f32.mrb[0].mxu0 }
 0x103   :  { %2252 = vtanh.f32 %v2048_v11  ;;  %v196_v12 = vpop.f32.mrb[1].mxu0 }
 0x104   :  { %2254 = vtanh.f32 %v196_v12  ;;  %v2049_v13 = vpop.f32.mrb[2].mxu0 }
 0x105   :  { %2256 = vtanh.f32 %v2049_v13  ;;  %v199_v14 = vpop.f32.mrb[3].mxu0 }
 0x106   :  { %2258 = vtanh.f32 %v199_v14  ;;  %v71_v14 = vld [vmem:[%s2802_s0] sm:$0xff] }
 0x10a   :  { %v2052_v15 = vpop.f32.mrb[4].mxu0 }
 0x10b   :  { %2260 = vtanh.f32 %v2052_v15  ;;  %v212_v16 = vpop.f32.mrb[5].mxu0 }
 0x10c   :  { %2262 = vtanh.f32 %v212_v16  ;;  %v2053_v18 = vpop.f32.mrb[6].mxu0 }
 0x10d   :  { %v2253_v19 = vpop.eup %2252  ;;  %2264 = vtanh.f32 %v2053_v18  ;;  %v215_v20 = vpop.f32.mrb[7].mxu0 }
 0x10e   :  { %v2255_v21 = vpop.eup %2254  ;;  %2266 = vtanh.f32 %v215_v20  ;;  %v284_v22 = vmul.f32 %v2253_v19, %v2478_v17 }
 0x10f   :  { %v2257_v23 = vpop.eup %2256  ;;  %v282_v24 = vmul.f32 %v2255_v21, %v2478_v17 }
 0x110   :  { %v2259_v25 = vpop.eup %2258  ;;  %v305_v26 = vsel %vm298_vm1, %v284_v22, 0.0  ;;  %v285_v27 = vmul.f32 %v2257_v23, %v2478_v17  ;;  %v72_v22 = vld [vmem:[%s2802_s0 + $0x8] sm:$0xff]  ;;  %v69_v23 = vlaneseq }
 0x111   :  { %306 = vadd.xlane.f32.xlu1 %v305_v26  ;;  %v299_v28 = vsel %vm298_vm1, %v282_v24, 0.0  ;;  %v283_v29 = vmul.f32 %v2259_v25, %v2478_v17 }
 0x112   :  { %300 = vadd.xlane.f32.xlu0 %v299_v28  ;;  %v2056_v30 = vpop.f32.mrb[8].mxu0  ;;  %v308_v32 = vsel %vm298_vm1, %v285_v27, 0.0  ;;  %v2518_v24 = vand.u32 127, %v69_v23  ;;  %v2520_v25 = vshrl.u32 %v69_v23, 7 }
 0x113   :  { %2268 = vtanh.f32 %v2056_v30  ;;  %v228_v31 = vpop.f32.mrb[9].mxu0  ;;  %v302_v35 = vsel %vm298_vm1, %v283_v29, 0.0 }
 0x114   :  { %2270 = vtanh.f32 %v228_v31  ;;  %v2057_v33 = vpop.f32.mrb[10].mxu0  ;;  %v365_v28 = vsub.s32 %v2518_v24, %v2520_v25 }
 0x115   :  { %v2261_v34 = vpop.eup %2260  ;;  %309 = vadd.xlane.f32.xlu1 %v308_v32  ;;  %v231_v36 = vpop.f32.mrb[11].mxu0  ;;  %2272 = vtanh.f32 %v2057_v33 }
 0x116   :  { %v2263_v37 = vpop.eup %2262  ;;  %303 = vadd.xlane.f32.xlu0 %v302_v35  ;;  %v288_v38 = vmul.f32 %v2261_v34, %v2478_v17  ;;  %2274 = vtanh.f32 %v231_v36 }
 0x117   :  { %v2265_v39 = vpop.eup %2264  ;;  %v286_v43 = vmul.f32 %v2263_v37, %v2478_v17 }
 0x118   :  { %v2267_v40 = vpop.eup %2266  ;;  %v317_v41 = vsel %vm298_vm1, %v288_v38, 0.0  ;;  %v289_v42 = vmul.f32 %v2265_v39, %v2478_v17 }
 0x119   :  { %v287_v45 = vmul.f32 %v2267_v40, %v2478_v17  ;;  %v311_v50 = vsel %vm298_vm1, %v286_v43, 0.0 }
 0x11a   :  { %318 = vadd.xlane.f32.xlu0 %v317_v41  ;;  %v320_v44 = vsel %vm298_vm1, %v289_v42, 0.0  ;;  %v2060_v46 = vpop.f32.mrb[12].mxu0 }
 0x11b   :  { %321 = vadd.xlane.f32.xlu1 %v320_v44  ;;  %v244_v47 = vpop.f32.mrb[13].mxu0  ;;  %v314_v53 = vsel %vm298_vm1, %v287_v45, 0.0  ;;  %2276 = vtanh.f32 %v2060_v46 }
 0x11c   :  { %v2061_v48 = vpop.f32.mrb[14].mxu0  ;;  %2278 = vtanh.f32 %v244_v47 }
 0x11d   :  { %v2269_v49 = vpop.eup %2268  ;;  %v247_v51 = vpop.f32.mrb[15].mxu0  ;;  %2280 = vtanh.f32 %v2061_v48 }
 0x11e   :  { %v2271_v52 = vpop.eup %2270  ;;  %312 = vadd.xlane.f32.xlu0 %v311_v50  ;;  %v292_v54 = vmul.f32 %v2269_v49, %v2478_v17  ;;  %2282 = vtanh.f32 %v247_v51 }
 0x11f   :  { %315 = vadd.xlane.f32.xlu1 %v314_v53  ;;  %v290_v56 = vmul.f32 %v2271_v52, %v2478_v17  ;;  %v2273_v57 = vpop.eup %2272 }
 0x120   :  { %v329_v55 = vsel %vm298_vm1, %v292_v54, 0.0  ;;  %v293_v59 = vmul.f32 %v2273_v57, %v2478_v17  ;;  %v2275_v60 = vpop.eup %2274 }
 0x121   :  { %v323_v58 = vsel %vm298_vm1, %v290_v56, 0.0  ;;  %v291_v62 = vmul.f32 %v2275_v60, %v2478_v17 }
 0x122   :  { %v332_v61 = vsel %vm298_vm1, %v293_v59, 0.0 }
 0x123   :  { %330 = vadd.xlane.f32.xlu1 %v329_v55  ;;  %v326_v0 = vsel %vm298_vm1, %v291_v62, 0.0 }
 0x125   :  { %v2277_v63 = vpop.eup %2276 }
 0x126   :  { %v296_v1 = vmul.f32 %v2277_v63, %v2478_v17  ;;  %v2279_v10 = vpop.eup %2278 }
 0x127   :  { %324 = vadd.xlane.f32.xlu1 %v323_v58  ;;  %v294_v12 = vmul.f32 %v2279_v10, %v2478_v17  ;;  %v2281_v13 = vpop.eup %2280 }
 0x128   :  { %v341_v11 = vsel %vm298_vm1, %v296_v1, 0.0  ;;  %v297_v16 = vmul.f32 %v2281_v13, %v2478_v17  ;;  %v2283_v18 = vpop.eup %2282 }
 0x129   :  { %v335_v15 = vsel %vm298_vm1, %v294_v12, 0.0  ;;  %v295_v20 = vmul.f32 %v2283_v18, %v2478_v17 }
 0x12a   :  { %v344_v19 = vsel %vm298_vm1, %v297_v16, 0.0 }
 0x12b   :  { %333 = vadd.xlane.f32.xlu1 %v332_v61  ;;  %v338_v21 = vsel %vm298_vm1, %v295_v20, 0.0 }
 0x12f   :  { %327 = vadd.xlane.f32.xlu1 %v326_v0 }
 0x133   :  { %342 = vadd.xlane.f32.xlu1 %v341_v11 }
 0x134   :  { %74 = vperm.xlu0 %2200, %v71_v14  }
 0x137   :  { %336 = vadd.xlane.f32.xlu1 %v335_v15 }
 0x13b   :  { %345 = vadd.xlane.f32.xlu1 %v344_v19 }
 0x13f   :  { %339 = vadd.xlane.f32.xlu1 %v338_v21 }
 0x150   :  { %77 = vperm.xlu1 %2201, %v72_v22  }
 0x19e   :  { %v307_v26 = vpop.xlane.xlu1 %306 }
 0x19f   :  { %v301_v27 = vpop.xlane.xlu0 %300  ;;  %v374_v34 = vrot.slane %v307_v26, %v365_v28 }
 0x1a0   :  { %v366_v31 = vrot.slane %v301_v27, %v365_v28 }
 0x1a2   :  { %v310_v29 = vpop.xlane.xlu1 %309 }
 0x1a3   :  { %v304_v17 = vpop.xlane.xlu0 %303  ;;  %v378_v37 = vrot.slane %v310_v29, %v365_v28 }
 0x1a4   :  { %v370_v30 = vrot.slane %v304_v17, %v365_v28 }
 0x1a6   :  { %v428_v32 = vsel %vm427_vm2, %v370_v30, %v366_v31 }
 0x1a7   :  { %v319_v33 = vpop.xlane.xlu0 %318  ;;  %v430_v36 = vsel %vm429_vm3, %v374_v34, %v428_v32 }
 0x1a8   :  { %v322_v35 = vpop.xlane.xlu1 %321  ;;  %v432_v41 = vsel %vm431_vm4, %v378_v37, %v430_v36  ;;  %v390_v44 = vrot.slane %v319_v33, %v365_v28 }
 0x1a9   :  { %v394_v48 = vrot.slane %v322_v35, %v365_v28 }
 0x1ab   :  { %v313_v38 = vpop.xlane.xlu0 %312 }
 0x1ac   :  { %v382_v39 = vrot.slane %v313_v38, %v365_v28  ;;  %v316_v40 = vpop.xlane.xlu1 %315  ;;  %v488_v38 = vsub.s32 1, %v2520_v25 }
 0x1ad   :  { %v386_v42 = vrot.slane %v316_v40, %v365_v28 }
 0x1ae   :  { %v434_v43 = vsel %vm433_vm5, %v382_v39, %v432_v41  ;;  %v481_v39 = vsub.s32 0, %v2520_v25 }
 0x1af   :  { %v436_v45 = vsel %vm435_vm6, %v386_v42, %v434_v43  ;;  %v2212_v42 = vld [vmem:[#allocation5] sm:$0xff]   ;;  %v2373_v43 = vmov 0.0  }
 0x1b0   :  { %v331_v46 = vpop.xlane.xlu1 %330  ;;  %v438_v47 = vsel %vm437_vm7, %v390_v44, %v436_v45  ;;  %2062 = vmatprep.subr.bf16.mxu1 %v2373_v43  ;;  %2094 = vmatprep.subr.bf16.mxu0 %v2373_v43  ;;  %v495_v45 = vsub.s32 2, %v2520_v25 }
 0x1b1   :  { %v440_v51 = vsel %vm439_vm8, %v394_v48, %v438_v47  ;;  %v406_v59 = vrot.slane %v331_v46, %v365_v28  ;;  %v502_v46 = vsub.s32 3, %v2520_v25  ;;  %2063 = vmatpush3.bf16.msra.mxu1 %v2212_v42  ;;  %v2213_v47 = vld [vmem:[#allocation5 + $0x8] sm:$0xff]   ;;  %2066 = vmatprep.mubr.msk.bf16.mxu1 %vm2374_vm12, %v2373_v43 }
 0x1b2   :  { %2064 = vmatprep.subr.bf16.mxu1 %v2373_v43  ;;  %2098 = vmatprep.mubr.msk.bf16.mxu0 %vm2374_vm12, %v2373_v43 }
 0x1b3   :  { %v75_v49 = vpop.permute.xlu0 %74 }
 0x1b4   :  { %vm79_vm10 = vcmp.lt.s32.totalorder %v2518_v24, %v75_v49  ;;  %v325_v50 = vpop.xlane.xlu1 %324 }
 0x1b5   :  { %v450_v52 = vsel %vm79_vm10, %v440_v51, -1e+30  ;;  %v398_v57 = vrot.slane %v325_v50, %v365_v28  ;;  %v509_v50 = vsub.s32 4, %v2520_v25  ;;  %v516_v51 = vsub.s32 5, %v2520_v25  ;;  %2065 = vmatpush3.bf16.msra.mxu1 %v2213_v47 }
 0x1b6   :  { %v453_v53 = vsel %vm452_vm9, %v450_v52, -inf  ;;  %2070 = vmatprep.subr.bf16.mxu1 %v2373_v43 }
 0x1b7   :  { %454 = vmax.xlane.f32.xlu0 %v453_v53 }
 0x1b8   :  { %v334_v54 = vpop.xlane.xlu1 %333 }
 0x1b9   :  { %v410_v62 = vrot.slane %v334_v54, %v365_v28 }
 0x1bc   :  { %v328_v55 = vpop.xlane.xlu1 %327 }
 0x1bd   :  { %v402_v58 = vrot.slane %v328_v55, %v365_v28  ;;  %v523_v55 = vsub.s32 6, %v2520_v25 }
 0x1bf   :  { %v441_v61 = vsel %vm427_vm2, %v402_v58, %v398_v57  ;;  %v2217_v57 = vld [vmem:[#allocation5 + $0x48] sm:$0xff]  }
 0x1c0   :  { %v343_v56 = vpop.xlane.xlu1 %342  ;;  %v442_v63 = vsel %vm429_vm3, %v406_v59, %v441_v61 }
 0x1c1   :  { %v443_v10 = vsel %vm431_vm4, %v410_v62, %v442_v63  ;;  %v422_v11 = vrot.slane %v343_v56, %v365_v28  ;;  %v530_v56 = vsub.s32 7, %v2520_v25 }
 0x1c4   :  { %v337_v60 = vpop.xlane.xlu1 %336 }
 0x1c5   :  { %v414_v1 = vrot.slane %v337_v60, %v365_v28 }
 0x1c7   :  { %v444_v15 = vsel %vm433_vm5, %v414_v1, %v443_v10 }
 0x1c8   :  { %v346_v0 = vpop.xlane.xlu1 %345 }
 0x1c9   :  { %v426_v13 = vrot.slane %v346_v0, %v365_v28 }
 0x1cc   :  { %v340_v12 = vpop.xlane.xlu1 %339 }
 0x1cd   :  { %v418_v14 = vrot.slane %v340_v12, %v365_v28 }
 0x1cf   :  { %v445_v16 = vsel %vm435_vm6, %v418_v14, %v444_v15  ;;  %v591_v15 = vunpack.c.l.bf16 %v2443_v2 }
 0x1d0   :  { %v78_v18 = vpop.permute.xlu1 %77  ;;  %v446_v19 = vsel %vm437_vm7, %v422_v11, %v445_v16  ;;  %v592_v16 = vunpack.c.h.bf16 %v2443_v2  ;;  %v596_v2 = vunpack.c.h.bf16 %v2447_v4 }
 0x1d1   :  { %vm80_vm11 = vcmp.lt.s32.totalorder %v2518_v24, %v78_v18  ;;  %v447_v20 = vsel %vm439_vm8, %v426_v13, %v446_v19 }
 0x1d2   :  { %v451_v21 = vsel %vm80_vm11, %v447_v20, -1e+30 }
 0x1d3   :  { %v456_v22 = vsel %vm452_vm9, %v451_v21, -inf }
 0x1d4   :  { %457 = vmax.xlane.f32.xlu1 %v456_v22  ;;  %v594_v22 = vunpack.c.h.bf16 %v2445_v3 }
 0x244   :  { %v455_v23 = vpop.xlane.xlu0 %454 }
 0x245   :  { %v459_v26 = vsub.f32 %v450_v52, %v455_v23  ;;  %v2214_v52 = vld [vmem:[#allocation5 + $0x40] sm:$0xff]   ;;  %v593_v23 = vunpack.c.l.bf16 %v2445_v3 }
 0x246   :  { %2095 = vmatpush3.bf16.msra.mxu0 %v2214_v52 }
 0x247   :  { %v461_v27 = vmul.f32 1.442695, %v459_v26  ;;  %2096 = vmatprep.subr.bf16.mxu0 %v2373_v43 }
 0x249   :  { %2284 = vpow2.f32 %v461_v27 }
 0x24a   :  { %2097 = vmatpush3.bf16.msra.mxu0 %v2217_v57 }
 0x24b   :  { %2110 = vmatprep.subr.bf16.mxu0 %v2373_v43 }
 0x253   :  { %v2285_v28 = vpop.eup %2284 }
 0x254   :  { %v465_v17 = vsel %vm79_vm10, %v2285_v28, 0.0 }
 0x255   :  { %v467_v29 = vsel %vm452_vm9, %v465_v17, 0.0 }
 0x256   :  { %468 = vadd.xlane.f32.xlu0 %v467_v29 }
 0x261   :  { %v458_v30 = vpop.xlane.xlu1 %457 }
 0x262   :  { %v460_v31 = vsub.f32 %v451_v21, %v458_v30 }
 0x264   :  { %v463_v32 = vmul.f32 1.442695, %v460_v31 }
 0x266   :  { %2286 = vpow2.f32 %v463_v32 }
 0x270   :  { %v2287_v33 = vpop.eup %2286 }
 0x271   :  { %v466_v34 = vsel %vm80_vm11, %v2287_v33, 0.0  ;;  %v595_v33 = vunpack.c.l.bf16 %v2447_v4 }
 0x272   :  { %v470_v35 = vsel %vm452_vm9, %v466_v34, 0.0 }
 0x273   :  { %471 = vadd.xlane.f32.xlu0 %v470_v35 }
 0x2e3   :  { %v469_v36 = vpop.xlane.xlu0 %468 }
 0x2e4   :  { %v473_v37 = vadd.f32 1e-09, %v469_v36 }
 0x2e6   :  { %2288 = vrcp.f32 %v473_v37 }
 0x2f0   :  { %v2289_v40 = vpop.eup %2288 }
 0x2f1   :  { %v477_v41 = vmul.f32 %v2289_v40, %v465_v17 }
 0x2f3   :  { %v489_v24 = vrot.slane %v477_v41, %v488_v38  ;;  %v482_v44 = vrot.slane %v477_v41, %v481_v39  ;;  %v496_v48 = vrot.slane %v477_v41, %v495_v45  ;;  %v503_v49 = vrot.slane %v477_v41, %v502_v46 }
 0x2f4   :  { %v510_v53 = vrot.slane %v477_v41, %v509_v50  ;;  %v517_v54 = vrot.slane %v477_v41, %v516_v51  ;;  %v524_v58 = vrot.slane %v477_v41, %v523_v55  ;;  %v531_v59 = vrot.slane %v477_v41, %v530_v56 }
 0x2f5   :  { %491 = vbcast.lane.b32.xlu1 %v489_v24, 256  ;;  %484 = vbcast.lane.b32.xlu0 %v482_v44, 256 }
 0x2f9   :  { %498 = vbcast.lane.b32.xlu1 %v496_v48, 256  ;;  %505 = vbcast.lane.b32.xlu0 %v503_v49, 256 }
 0x2fd   :  { %512 = vbcast.lane.b32.xlu1 %v510_v53, 256  ;;  %519 = vbcast.lane.b32.xlu0 %v517_v54, 256 }
 0x300   :  { %v472_v60 = vpop.xlane.xlu0 %471 }
 0x301   :  { %v474_v61 = vadd.f32 1e-09, %v472_v60  ;;  %526 = vbcast.lane.b32.xlu1 %v524_v58, 256  ;;  %533 = vbcast.lane.b32.xlu0 %v531_v59, 256 }
 0x303   :  { %2290 = vrcp.f32 %v474_v61 }
 0x30d   :  { %v2291_v25 = vpop.eup %2290 }
 0x30e   :  { %v478_v62 = vmul.f32 %v2291_v25, %v466_v34 }
 0x310   :  { %v545_v63 = vrot.slane %v478_v62, %v488_v38  ;;  %v538_v0 = vrot.slane %v478_v62, %v481_v39  ;;  %v559_v1 = vrot.slane %v478_v62, %v502_v46  ;;  %v552_v10 = vrot.slane %v478_v62, %v495_v45 }
 0x311   :  { %v573_v11 = vrot.slane %v478_v62, %v516_v51  ;;  %v566_v12 = vrot.slane %v478_v62, %v509_v50  ;;  %v587_v13 = vrot.slane %v478_v62, %v530_v56  ;;  %v580_v14 = vrot.slane %v478_v62, %v523_v55 }
 0x312   :  { %547 = vbcast.lane.b32.xlu0 %v545_v63, 256  ;;  %540 = vbcast.lane.b32.xlu1 %v538_v0, 256  ;;  %v598_v45 = vunpack.c.h.bf16 %v2451_v5  ;;  %v597_v46 = vunpack.c.l.bf16 %v2451_v5 }
 0x316   :  { %561 = vbcast.lane.b32.xlu0 %v559_v1, 256  ;;  %554 = vbcast.lane.b32.xlu1 %v552_v10, 256 }
 0x31a   :  { %575 = vbcast.lane.b32.xlu0 %v573_v11, 256  ;;  %568 = vbcast.lane.b32.xlu1 %v566_v12, 256 }
 0x31e   :  { %589 = vbcast.lane.b32.xlu0 %v587_v13, 256  ;;  %582 = vbcast.lane.b32.xlu1 %v580_v14, 256 }
 0x367   :  { %v485_v18 = vpop.permute.xlu0 %484  ;;  %v492_v19 = vpop.permute.xlu1 %491 }
 0x368   :  { %v607_v20 = vmul.f32 %v591_v15, %v485_v18  ;;  %v608_v21 = vmul.f32 %v592_v16, %v492_v19  ;;  %v2215_v19 = vld [vmem:[#allocation5 + $0x10] sm:$0xff]  }
 0x36a   :  { %v623_v26 = vsel %vm137_vm0, %v607_v20, 0.0  ;;  %v630_v27 = vsel %vm137_vm0, %v608_v21, 0.0 }
 0x36b   :  { %v624_v28 = vrot.slane %v623_v26, 4  ;;  %v631_v17 = vrot.slane %v630_v27, 4  ;;  %v506_v29 = vpop.permute.xlu0 %505  ;;  %v499_v30 = vpop.permute.xlu1 %498 }
 0x36c   :  { %v610_v31 = vmul.f32 %v594_v22, %v506_v29  ;;  %v609_v32 = vmul.f32 %v593_v23, %v499_v30 }
 0x36d   :  { %v625_v34 = vadd.f32 %v624_v28, %v623_v26  ;;  %v632_v35 = vadd.f32 %v631_v17, %v630_v27 }
 0x36e   :  { %v644_v36 = vsel %vm137_vm0, %v610_v31, 0.0  ;;  %v637_v3 = vsel %vm137_vm0, %v609_v32, 0.0 }
 0x36f   :  { %v626_v37 = vrot.slane %v625_v34, 2  ;;  %v633_v38 = vrot.slane %v632_v35, 2  ;;  %v645_v39 = vrot.slane %v644_v36, 4  ;;  %v638_v40 = vrot.slane %v637_v3, 4  ;;  %v520_v41 = vpop.permute.xlu0 %519  ;;  %v513_v42 = vpop.permute.xlu1 %512 }
 0x370   :  { %v612_v24 = vmul.f32 %v596_v2, %v520_v41  ;;  %v611_v44 = vmul.f32 %v595_v33, %v513_v42  ;;  %v2216_v2 = vld [vmem:[#allocation5 + $0x18] sm:$0xff]  }
 0x371   :  { %v627_v47 = vadd.f32 %v626_v37, %v625_v34  ;;  %v634_v4 = vadd.f32 %v633_v38, %v632_v35  ;;  %v646_v48 = vadd.f32 %v645_v39, %v644_v36  ;;  %v639_v49 = vadd.f32 %v638_v40, %v637_v3  ;;  %v2219_v40 = vld [vmem:[#allocation5 + $0x60] sm:$0xff]  }
 0x372   :  { %v658_v50 = vsel %vm137_vm0, %v612_v24, 0.0  ;;  %v651_v51 = vsel %vm137_vm0, %v611_v44, 0.0  ;;  %v2218_v44 = vld [vmem:[#allocation5 + $0x20] sm:$0xff]  }
 0x373   :  { %v628_v52 = vrot.slane %v627_v47, 1  ;;  %v635_v53 = vrot.slane %v634_v4, 1  ;;  %v647_v54 = vrot.slane %v646_v48, 2  ;;  %v640_v55 = vrot.slane %v639_v49, 2  ;;  %v534_v56 = vpop.permute.xlu0 %533  ;;  %v527_v57 = vpop.permute.xlu1 %526 }
 0x374   :  { %v659_v58 = vrot.slane %v658_v50, 4  ;;  %v652_v59 = vrot.slane %v651_v51, 4  ;;  %v614_v60 = vmul.f32 %v598_v45, %v534_v56  ;;  %v613_v61 = vmul.f32 %v597_v46, %v527_v57  ;;  %v2220_v56 = vld [vmem:[#allocation5 + $0x28] sm:$0xff]  }
 0x375   :  { %v629_v25 = vadd.f32 %v628_v52, %v627_v47  ;;  %v636_v5 = vadd.f32 %v635_v53, %v634_v4  ;;  %v648_v62 = vadd.f32 %v647_v54, %v646_v48  ;;  %v641_v63 = vadd.f32 %v640_v55, %v639_v49  ;;  %v2221_v53 = vld [vmem:[#allocation5 + $0x68] sm:$0xff]  }
 0x376   :  { %v660_v0 = vadd.f32 %v659_v58, %v658_v50  ;;  %v653_v1 = vadd.f32 %v652_v59, %v651_v51  ;;  %v672_v10 = vsel %vm137_vm0, %v614_v60, 0.0  ;;  %v665_v11 = vsel %vm137_vm0, %v613_v61, 0.0 }
 0x377   :  { %v735_v12 = vmul.f32 %v629_v25, %v629_v25  ;;  %v649_v13 = vrot.slane %v648_v62, 1  ;;  %v642_v14 = vrot.slane %v641_v63, 1  ;;  %v673_v18 = vrot.slane %v672_v10, 4 }
 0x378   :  { %v661_v15 = vrot.slane %v660_v0, 2  ;;  %v654_v16 = vrot.slane %v653_v1, 2  ;;  %v736_v20 = vmul.f32 %v636_v5, %v636_v5  ;;  %v666_v22 = vrot.slane %v665_v11, 4 }
 0x379   :  { %v2586_v21 = vadd.f32 %v649_v13, %v648_v62  ;;  %v793_v23 = vpack.c.bf16 %v629_v25, %v629_v25  ;;  %v2588_v26 = vadd.f32 %v642_v14, %v641_v63  ;;  %v674_v17 = vadd.f32 %v673_v18, %v672_v10 }
 0x37a   :  { %v662_v27 = vadd.f32 %v661_v15, %v660_v0  ;;  %v655_v28 = vadd.f32 %v654_v16, %v653_v1  ;;  %v667_v29 = vadd.f32 %v666_v22, %v665_v11  ;;  %v767_v35 = vsel %vm427_vm2, %v736_v20, %v735_v12  ;;  %v2222_v15 = vld [vmem:[#allocation5 + $0x30] sm:$0xff]   ;;  %v2224_v16 = vld [vmem:[#allocation5 + $0x80] sm:$0xff]  }
 0x37b   :  { %2067 = vmatmul.mubr.msk.bf16.vlgmr.msra.gmra.mrb[0].mxu1 %vm137_vm0, %v793_v23  ;;  %v737_v30 = vmul.f32 %v2588_v26, %v2588_v26  ;;  %v675_v33 = vrot.slane %v674_v17, 2  ;;  %v738_v36 = vmul.f32 %v2586_v21, %v2586_v21  ;;  %v600_v45 = vunpack.c.h.bf16 %v2455_v6 }
 0x37c   :  { %v663_v31 = vrot.slane %v662_v27, 1  ;;  %v656_v32 = vrot.slane %v655_v28, 1  ;;  %2071 = vmatpush3.bf16.msra.mxu1 %v2215_v19  ;;  %2074 = vmatprep.mubr.msk.bf16.mxu1 %vm2374_vm12, %v2373_v43  ;;  %v668_v34 = vrot.slane %v667_v29, 2  ;;  %v794_v46 = vpack.c.bf16 %v636_v5, %v636_v5 }
 0x37d   :  { %2072 = vmatprep.subr.bf16.mxu1 %v2373_v43  ;;  %v676_v38 = vadd.f32 %v675_v33, %v674_v17  ;;  %v768_v41 = vsel %vm429_vm3, %v737_v30, %v767_v35  ;;  %v599_v48 = vunpack.c.l.bf16 %v2455_v6  ;;  %v602_v59 = vunpack.c.h.bf16 %v2459_v7  ;;  %v2223_v33 = vld [vmem:[#allocation5 + $0x38] sm:$0xff]  }
 0x37e   :  { %v657_v3 = vadd.f32 %v656_v32, %v655_v28  ;;  %v2599_v37 = vadd.f32 %v663_v31, %v662_v27  ;;  %v669_v39 = vadd.f32 %v668_v34, %v667_v29  ;;  %v769_v49 = vsel %vm431_vm4, %v738_v36, %v768_v41  ;;  %v2226_v34 = vld [vmem:[#allocation5 + $0x88] sm:$0xff]  }
 0x37f   :  { %v677_v47 = vrot.slane %v676_v38, 1  ;;  %v601_v60 = vunpack.c.l.bf16 %v2459_v7  ;;  %v604_v5 = vunpack.c.h.bf16 %v2463_v8  ;;  %v603_v7 = vunpack.c.l.bf16 %v2463_v8 }
 0x380   :  { %v739_v42 = vmul.f32 %v657_v3, %v657_v3  ;;  %v797_v24 = vpack.c.bf16 %v657_v3, %v657_v3  ;;  %2073 = vmatpush3.bf16.msra.mxu1 %v2216_v2  ;;  %v670_v4 = vrot.slane %v669_v39, 1  ;;  %v740_v50 = vmul.f32 %v2599_v37, %v2599_v37 }
 0x381   :  { %2078 = vmatprep.subr.bf16.mxu1 %v2373_v43  ;;  %v2609_v51 = vadd.f32 %v677_v47, %v676_v38  ;;  %v795_v18 = vpack.c.bf16 %v2588_v26, %v2588_v26  ;;  %v606_v3 = vunpack.c.h.bf16 %v2471_v9  ;;  %v605_v38 = vunpack.c.l.bf16 %v2471_v9 }
 0x382   :  { %2099 = vmatmul.mubr.msk.bf16.vlgmr.msra.gmra.mrb[16].mxu0 %vm137_vm0, %v797_v24  ;;  %v671_v52 = vadd.f32 %v670_v4, %v669_v39  ;;  %v770_v6 = vsel %vm433_vm5, %v739_v42, %v769_v49  ;;  %v796_v24 = vpack.c.bf16 %v2586_v21, %v2586_v21 }
 0x383   :  { %2075 = vmatmul.mubr.msk.bf16.vlgmr.msra.gmra.mrb[4].mxu1 %vm137_vm0, %v794_v46  ;;  %2111 = vmatpush3.bf16.msra.mxu0 %v2219_v40  ;;  %v742_v25 = vmul.f32 %v2609_v51, %v2609_v51  ;;  %v771_v0 = vsel %vm435_vm6, %v740_v50, %v770_v6  ;;  %v2225_v50 = vld [vmem:[#allocation5 + $0x50] sm:$0xff]  }
 0x384   :  { %2079 = vmatpush3.bf16.msra.mxu1 %v2218_v44  ;;  %v548_v54 = vpop.permute.xlu0 %547  ;;  %v541_v55 = vpop.permute.xlu1 %540  ;;  %2112 = vmatprep.subr.bf16.mxu0 %v2373_v43  ;;  %v741_v61 = vmul.f32 %v671_v52, %v671_v52  ;;  %v799_v1 = vpack.c.bf16 %v671_v52, %v671_v52 }
 0x385   :  { %v616_v57 = vmul.f32 %v600_v45, %v548_v54  ;;  %2080 = vmatprep.subr.bf16.mxu1 %v2373_v43  ;;  %v615_v58 = vmul.f32 %v599_v48, %v541_v55  ;;  %2082 = vmatprep.mubr.msk.bf16.mxu1 %vm2374_vm12, %v2373_v43 }
 0x386   :  { %2114 = vmatprep.mubr.msk.bf16.mxu0 %vm2374_vm12, %v2373_v43  ;;  %v772_v13 = vsel %vm437_vm7, %v741_v61, %v771_v0 }
 0x387   :  { %v686_v62 = vsel %vm137_vm0, %v616_v57, 0.0  ;;  %v679_v63 = vsel %vm137_vm0, %v615_v58, 0.0  ;;  %2113 = vmatpush3.bf16.msra.mxu0 %v2221_v53  ;;  %v773_v8 = vsel %vm439_vm8, %v742_v25, %v772_v13  ;;  %v2228_v25 = vld [vmem:[#allocation5 + $0xa0] sm:$0xff]  }
 0x388   :  { %v687_v10 = vrot.slane %v686_v62, 4  ;;  %v680_v11 = vrot.slane %v679_v63, 4  ;;  %2081 = vmatpush3.bf16.msra.mxu1 %v2220_v56  ;;  %v562_v12 = vpop.permute.xlu0 %561  ;;  %v555_v14 = vpop.permute.xlu1 %554  ;;  %2126 = vmatprep.subr.bf16.mxu0 %v2373_v43  ;;  %v783_v27 = vsel %vm137_vm0, %v773_v8, 0.0 }
 0x389   :  { %v618_v19 = vmul.f32 %v602_v59, %v562_v12  ;;  %2086 = vmatprep.subr.bf16.mxu1 %v2373_v43  ;;  %v617_v20 = vmul.f32 %v601_v60, %v555_v14  ;;  %784 = vadd.xlane.f32.xlu1 %v783_v27 }
 0x38a   :  { %v688_v22 = vadd.f32 %v687_v10, %v686_v62  ;;  %v681_v23 = vadd.f32 %v680_v11, %v679_v63  ;;  %2115 = vmatmul.mubr.msk.bf16.vlgmr.msra.gmra.mrb[20].mxu0 %vm137_vm0, %v799_v1  ;;  %v2227_v62 = vld [vmem:[#allocation5 + $0x58] sm:$0xff]  }
 0x38b   :  { %v700_v28 = vsel %vm137_vm0, %v618_v19, 0.0  ;;  %v693_v17 = vsel %vm137_vm0, %v617_v20, 0.0  ;;  %2083 = vmatmul.mubr.msk.bf16.vlgmr.msra.gmra.mrb[8].mxu1 %vm137_vm0, %v795_v18  ;;  %2127 = vmatpush3.bf16.msra.mxu0 %v2224_v16  ;;  %v2230_v19 = vld [vmem:[#allocation5 + $0xa8] sm:$0xff]  }
 0x38c   :  { %v689_v26 = vrot.slane %v688_v22, 2  ;;  %v682_v29 = vrot.slane %v681_v23, 2  ;;  %v701_v30 = vrot.slane %v700_v28, 4  ;;  %v694_v31 = vrot.slane %v693_v17, 4  ;;  %2087 = vmatpush3.bf16.msra.mxu1 %v2222_v15  ;;  %v576_v32 = vpop.permute.xlu0 %575  ;;  %v569_v2 = vpop.permute.xlu1 %568  ;;  %2090 = vmatprep.mubr.msk.bf16.mxu1 %vm2374_vm12, %v2373_v43 }
 0x38d   :  { %v620_v35 = vmul.f32 %v604_v5, %v576_v32  ;;  %2088 = vmatprep.subr.bf16.mxu1 %v2373_v43  ;;  %v619_v36 = vmul.f32 %v603_v7, %v569_v2  ;;  %2128 = vmatprep.subr.bf16.mxu0 %v2373_v43 }
 0x38e   :  { %v690_v39 = vadd.f32 %v689_v26, %v688_v22  ;;  %v683_v40 = vadd.f32 %v682_v29, %v681_v23  ;;  %v702_v41 = vadd.f32 %v701_v30, %v700_v28  ;;  %v695_v42 = vadd.f32 %v694_v31, %v693_v17  ;;  %2130 = vmatprep.mubr.msk.bf16.mxu0 %vm2374_vm12, %v2373_v43  ;;  %v2229_v22 = vld [vmem:[#allocation5 + $0x70] sm:$0xff]  }
 0x38f   :  { %v714_v44 = vsel %vm137_vm0, %v620_v35, 0.0  ;;  %v707_v45 = vsel %vm137_vm0, %v619_v36, 0.0  ;;  %2129 = vmatpush3.bf16.msra.mxu0 %v2226_v34  ;;  %v798_v23 = vpack.c.bf16 %v2599_v37, %v2599_v37  ;;  %v2232_v37 = vld [vmem:[#allocation5 + $0xc0] sm:$0xff]   ;;  %v2231_v36 = vld [vmem:[#allocation5 + $0x78] sm:$0xff]  }
 0x390   :  { %v691_v46 = vrot.slane %v690_v39, 1  ;;  %v684_v47 = vrot.slane %v683_v40, 1  ;;  %v703_v4 = vrot.slane %v702_v41, 2  ;;  %v696_v9 = vrot.slane %v695_v42, 2  ;;  %2089 = vmatpush3.bf16.msra.mxu1 %v2223_v33  ;;  %v590_v48 = vpop.permute.xlu0 %589  ;;  %v583_v49 = vpop.permute.xlu1 %582  ;;  %2142 = vmatprep.subr.bf16.mxu0 %v2373_v43 }
 0x391   :  { %v715_v52 = vrot.slane %v714_v44, 4  ;;  %v708_v53 = vrot.slane %v707_v45, 4  ;;  %v622_v54 = vmul.f32 %v606_v3, %v590_v48  ;;  %2102 = vmatprep.subr.bf16.mxu1 %v2373_v43  ;;  %v621_v21 = vmul.f32 %v605_v38, %v583_v49  ;;  %v2235_v49 = vld [vmem:[#allocation5 + $0x98] sm:$0xff]  }
 0x392   :  { %v2653_v55 = vadd.f32 %v691_v46, %v690_v39  ;;  %v685_v56 = vadd.f32 %v684_v47, %v683_v40  ;;  %v704_v6 = vadd.f32 %v703_v4, %v702_v41  ;;  %v697_v57 = vadd.f32 %v696_v9, %v695_v42  ;;  %v2234_v41 = vld [vmem:[#allocation5 + $0xc8] sm:$0xff]   ;;  %v2236_v9 = vld [vmem:[#allocation5 + $0xe0] sm:$0xff]  }
 0x393   :  { %v716_v58 = vadd.f32 %v715_v52, %v714_v44  ;;  %v709_v59 = vadd.f32 %v708_v53, %v707_v45  ;;  %v728_v60 = vsel %vm137_vm0, %v622_v54, 0.0  ;;  %v721_v61 = vsel %vm137_vm0, %v621_v21, 0.0  ;;  %2091 = vmatmul.mubr.msk.bf16.vlgmr.msra.gmra.mrb[12].mxu1 %vm137_vm0, %v796_v24  ;;  %v2233_v44 = vld [vmem:[#allocation5 + $0x90] sm:$0xff]  }
 0x394   :  { %v801_v5 = vpack.c.bf16 %v685_v56, %v685_v56  ;;  %2103 = vmatpush3.bf16.msra.mxu1 %v2225_v50  ;;  %v705_v63 = vrot.slane %v704_v6, 1  ;;  %v698_v0 = vrot.slane %v697_v57, 1  ;;  %2106 = vmatprep.mubr.msk.bf16.mxu1 %vm2374_vm12, %v2373_v43  ;;  %v744_v10 = vmul.f32 %v2653_v55, %v2653_v55 }
 0x395   :  { %v717_v7 = vrot.slane %v716_v58, 2  ;;  %v710_v1 = vrot.slane %v709_v59, 2  ;;  %2104 = vmatprep.subr.bf16.mxu1 %v2373_v43  ;;  %v743_v11 = vmul.f32 %v685_v56, %v685_v56  ;;  %v729_v12 = vrot.slane %v728_v60, 4  ;;  %v2238_v56 = vld [vmem:[#allocation5 + $0xe8] sm:$0xff]  }
 0x396   :  { %v722_v13 = vrot.slane %v721_v61, 4  ;;  %2131 = vmatmul.mubr.msk.bf16.vlgmr.msra.gmra.mrb[24].mxu0 %vm137_vm0, %v801_v5  ;;  %v2664_v14 = vadd.f32 %v705_v63, %v704_v6  ;;  %v699_v15 = vadd.f32 %v698_v0, %v697_v57  ;;  %v800_v42 = vpack.c.bf16 %v2609_v51, %v2609_v51  ;;  %v2237_v6 = vld [vmem:[#allocation5 + $0xb0] sm:$0xff]  }
 0x397   :  { %v718_v16 = vadd.f32 %v717_v7, %v716_v58  ;;  %v711_v18 = vadd.f32 %v710_v1, %v709_v59  ;;  %2143 = vmatpush3.bf16.msra.mxu0 %v2228_v25  ;;  %v730_v8 = vadd.f32 %v729_v12, %v728_v60  ;;  %2146 = vmatprep.mubr.msk.bf16.mxu0 %vm2374_vm12, %v2373_v43  ;;  %v2239_v59 = vld [vmem:[#allocation5 + $0xb8] sm:$0xff]   ;;  %v2240_v60 = vld [vmem:[#allocation5 + $0xd0] sm:$0xff]  }
 0x398   :  { %v723_v20 = vadd.f32 %v722_v13, %v721_v61  ;;  %2105 = vmatpush3.bf16.msra.mxu1 %v2227_v62  ;;  %2144 = vmatprep.subr.bf16.mxu0 %v2373_v43  ;;  %v745_v27 = vmul.f32 %v699_v15, %v699_v15  ;;  %v774_v30 = vsel %vm427_vm2, %v744_v10, %v743_v11  ;;  %v2241_v61 = vld [vmem:[#allocation5 + $0xd8] sm:$0xff]   ;;  %v2242_v25 = vld [vmem:[#allocation5 + $0xf0] sm:$0xff]  }
 0x399   :  { %2118 = vmatprep.subr.bf16.mxu1 %v2373_v43  ;;  %v719_v28 = vrot.slane %v718_v16, 1  ;;  %v712_v17 = vrot.slane %v711_v18, 1  ;;  %v731_v26 = vrot.slane %v730_v8, 2  ;;  %v746_v31 = vmul.f32 %v2664_v14, %v2664_v14  ;;  %v2243_v62 = vld [vmem:[#allocation5 + $0xf8] sm:$0xff]  }
 0x39a   :  { %v724_v29 = vrot.slane %v723_v20, 2  ;;  %v803_v32 = vpack.c.bf16 %v699_v15, %v699_v15  ;;  %v775_v3 = vsel %vm429_vm3, %v745_v27, %v774_v30  ;;  %v802_v57 = vpack.c.bf16 %v2653_v55, %v2653_v55 }
 0x39b   :  { %2107 = vmatmul.mubr.msk.bf16.vlgmr.msra.gmra.mrb[16].mxu1 %vm137_vm0, %v798_v23  ;;  %2145 = vmatpush3.bf16.msra.mxu0 %v2230_v19  ;;  %v2676_v2 = vadd.f32 %v719_v28, %v718_v16  ;;  %v713_v33 = vadd.f32 %v712_v17, %v711_v18  ;;  %v732_v34 = vadd.f32 %v731_v26, %v730_v8 }
 0x39c   :  { %v725_v35 = vadd.f32 %v724_v29, %v723_v20  ;;  %2119 = vmatpush3.bf16.msra.mxu1 %v2229_v22  ;;  %2158 = vmatprep.subr.bf16.mxu0 %v2373_v43  ;;  %v776_v45 = vsel %vm431_vm4, %v746_v31, %v775_v3  ;;  %v804_v55 = vpack.c.bf16 %v2664_v14, %v2664_v14  ;;  %v2735_v14 = vld [vmem:[%s2807_s5] sm:$0xff] }
 0x39d   :  { %2120 = vmatprep.subr.bf16.mxu1 %v2373_v43  ;;  %v747_v38 = vmul.f32 %v713_v33, %v713_v33  ;;  %v733_v39 = vrot.slane %v732_v34, 1  ;;  %2122 = vmatprep.mubr.msk.bf16.mxu1 %vm2374_vm12, %v2373_v43  ;;  %v748_v24 = vmul.f32 %v2676_v2, %v2676_v2  ;;  %v805_v48 = vpack.c.bf16 %v713_v33, %v713_v33 }
 0x39e   :  { %2147 = vmatmul.mubr.msk.bf16.vlgmr.msra.gmra.mrb[28].mxu0 %vm137_vm0, %v803_v32  ;;  %v726_v40 = vrot.slane %v725_v35, 1  ;;  %v806_v5 = vpack.c.bf16 %v2676_v2, %v2676_v2  ;;  %v1805_v15 = vrot.slane %v2735_v14, 1 }
 0x39f   :  { %2159 = vmatpush3.bf16.msra.mxu0 %v2232_v37  ;;  %v734_v46 = vadd.f32 %v733_v39, %v732_v34  ;;  %2162 = vmatprep.mubr.msk.bf16.mxu0 %vm2374_vm12, %v2373_v43  ;;  %v777_v4 = vsel %vm433_vm5, %v747_v38, %v776_v45  ;;  %v1806_v37 = vrot.slane %v2735_v14, 2  ;;  %v1808_v45 = vrot.slane %v2735_v14, 4 }
 0x3a0   :  { %2121 = vmatpush3.bf16.msra.mxu1 %v2231_v36  ;;  %2160 = vmatprep.subr.bf16.mxu0 %v2373_v43  ;;  %v727_v47 = vadd.f32 %v726_v40, %v725_v35  ;;  %v778_v52 = vsel %vm435_vm6, %v748_v24, %v777_v4  ;;  %v1807_v4 = vrot.slane %v2735_v14, 3 }
 0x3a1   :  { %2134 = vmatprep.subr.bf16.mxu1 %v2373_v43  ;;  %v750_v50 = vmul.f32 %v734_v46, %v734_v46  ;;  %v808_v63 = vpack.c.bf16 %v734_v46, %v734_v46 }
 0x3a2   :  { %v749_v51 = vmul.f32 %v727_v47, %v727_v47  ;;  %v807_v58 = vpack.c.bf16 %v727_v47, %v727_v47 }
 0x3a3   :  { %2123 = vmatmul.mubr.msk.bf16.vlgmr.msra.gmra.mrb[20].mxu1 %vm137_vm0, %v800_v42  ;;  %2161 = vmatpush3.bf16.msra.mxu0 %v2234_v41 }
 0x3a4   :  { %2135 = vmatpush3.bf16.msra.mxu1 %v2233_v44  ;;  %2174 = vmatprep.subr.bf16.mxu0 %v2373_v43  ;;  %v779_v53 = vsel %vm437_vm7, %v749_v51, %v778_v52 }
 0x3a5   :  { %2136 = vmatprep.subr.bf16.mxu1 %v2373_v43  ;;  %2138 = vmatprep.mubr.msk.bf16.mxu1 %vm2374_vm12, %v2373_v43  ;;  %v780_v54 = vsel %vm439_vm8, %v750_v50, %v779_v53 }
 0x3a6   :  { %2163 = vmatmul.mubr.msk.bf16.vlgmr.msra.gmra.mrb[32].mxu0 %vm137_vm0, %v805_v48  ;;  %v786_v21 = vsel %vm137_vm0, %v780_v54, 0.0 }
 0x3a7   :  { %2175 = vmatpush3.bf16.msra.mxu0 %v2236_v9  ;;  %2178 = vmatprep.mubr.msk.bf16.mxu0 %vm2374_vm12, %v2373_v43 }
 0x3a8   :  { %2137 = vmatpush3.bf16.msra.mxu1 %v2235_v49  ;;  %787 = vadd.xlane.f32.xlu0 %v786_v21 }
 0x3a9   :  { %2150 = vmatprep.subr.bf16.mxu1 %v2373_v43  ;;  %2176 = vmatprep.subr.bf16.mxu0 %v2373_v43 }
 0x3ab   :  { %2139 = vmatmul.mubr.msk.bf16.vlgmr.msra.gmra.mrb[24].mxu1 %vm137_vm0, %v802_v57  ;;  %2177 = vmatpush3.bf16.msra.mxu0 %v2238_v56 }
 0x3ac   :  { %2151 = vmatpush3.bf16.msra.mxu1 %v2237_v6  ;;  %2154 = vmatprep.mubr.msk.bf16.mxu1 %vm2374_vm12, %v2373_v43 }
 0x3ad   :  { %2152 = vmatprep.subr.bf16.mxu1 %v2373_v43 }
 0x3ae   :  { %2179 = vmatmul.mubr.msk.bf16.vlgmr.msra.gmra.mrb[36].mxu0 %vm137_vm0, %v807_v58 }
 0x3b0   :  { %2153 = vmatpush3.bf16.msra.mxu1 %v2239_v59 }
 0x3b1   :  { %2166 = vmatprep.subr.bf16.mxu1 %v2373_v43 }
 0x3b3   :  { %2155 = vmatmul.mubr.msk.bf16.vlgmr.msra.gmra.mrb[28].mxu1 %vm137_vm0, %v804_v55 }
 0x3b4   :  { %2167 = vmatpush3.bf16.msra.mxu1 %v2240_v60  ;;  %2170 = vmatprep.mubr.msk.bf16.mxu1 %vm2374_vm12, %v2373_v43 }
 0x3b5   :  { %2168 = vmatprep.subr.bf16.mxu1 %v2373_v43 }
 0x3b8   :  { %2169 = vmatpush3.bf16.msra.mxu1 %v2241_v61  ;;  %v1810_v61 = vrot.slane %v2735_v14, 6 }
 0x3b9   :  { %2182 = vmatprep.subr.bf16.mxu1 %v2373_v43 }
 0x3bb   :  { %2171 = vmatmul.mubr.msk.bf16.vlgmr.msra.gmra.mrb[32].mxu1 %vm137_vm0, %v806_v5 }
 0x3bc   :  { %2183 = vmatpush3.bf16.msra.mxu1 %v2242_v25  ;;  %2186 = vmatprep.mubr.msk.bf16.mxu1 %vm2374_vm12, %v2373_v43 }
 0x3bd   :  { %2184 = vmatprep.subr.bf16.mxu1 %v2373_v43 }
 0x3c0   :  { %2185 = vmatpush3.bf16.msra.mxu1 %v2243_v62 }
 0x3c3   :  { %2187 = vmatmul.mubr.msk.bf16.vlgmr.msra.gmra.mrb[36].mxu1 %vm137_vm0, %v808_v63  ;;  %v1809_v63 = vrot.slane %v2735_v14, 5 }
 0x416   :  { %v785_v0 = vpop.xlane.xlu1 %784 }
 0x417   :  { %v789_v7 = vmax.f32 %v785_v0, 1e-16 }
 0x419   :  { %2292 = vrsqrt.f32 %v789_v7 }
 0x423   :  { %v2730_v13 = vpop.eup %2292 }
 0x424   :  { %v1755_v43 = vrot.slane %v2730_v13, 1  ;;  %v1756_v32 = vrot.slane %v2730_v13, 2  ;;  %v1758_v42 = vrot.slane %v2730_v13, 4  ;;  %v1757_v47 = vrot.slane %v2730_v13, 3 }
 0x425   :  { %v1760_v6 = vrot.slane %v2730_v13, 6  ;;  %v1759_v62 = vrot.slane %v2730_v13, 5 }
 0x435   :  { %v788_v51 = vpop.xlane.xlu0 %787 }
 0x436   :  { %v790_v53 = vmax.f32 %v788_v51, 1e-16 }
 0x438   :  { %2294 = vrsqrt.f32 %v790_v53 }
 0x44e   :  { %v922_v1 = vpop.f32.mrb[0].mxu1 }
 0x44f   :  { %v2068_v10 = vpop.f32.mrb[1].mxu1  ;;  %v1785_v8 = vmul.f32 %v2730_v13, %v922_v1 }
 0x450   :  { %v925_v11 = vpop.f32.mrb[2].mxu1 }
 0x451   :  { %v2069_v12 = vpop.f32.mrb[3].mxu1  ;;  %v1835_v29 = vmul.f32 %v2735_v14, %v1785_v8 }
 0x455   :  { %v1142_v16 = vpop.f32.mrb[16].mxu0 }
 0x456   :  { %v977_v18 = vpop.f32.mrb[4].mxu1  ;;  %v2100_v19 = vpop.f32.mrb[17].mxu0  ;;  %v1789_v44 = vmul.f32 %v1758_v42, %v1142_v16 }
 0x457   :  { %v1786_v20 = vmul.f32 %v1755_v43, %v977_v18  ;;  %v2076_v22 = vpop.f32.mrb[5].mxu1  ;;  %v1145_v23 = vpop.f32.mrb[18].mxu0 }
 0x458   :  { %v980_v27 = vpop.f32.mrb[6].mxu1  ;;  %v2101_v28 = vpop.f32.mrb[19].mxu0  ;;  %v1839_v50 = vmul.f32 %v1808_v45, %v1789_v44 }
 0x459   :  { %v1836_v17 = vmul.f32 %v1805_v15, %v1786_v20  ;;  %v2077_v26 = vpop.f32.mrb[7].mxu1  ;;  %v1761_v27 = vrot.slane %v2730_v13, 7  ;;  %v1811_v28 = vrot.slane %v2735_v14, 7  ;;  %v2765_v13 = vld [vmem:[%s2807_s5 + $0x8] sm:$0xff]  ;;  %s2375_s5 = smov [#allocation7]  }
 0x45a   :  { %v1873_v60 = vrot.slane %v1839_v50, 4  ;;  %v1812_v42 = vrot.slane %v2765_v13, 1  ;;  %s1904_s8 = sshll.u32 %s2375_s5, 4  ;;  %s1905_s8 = int_to_ptr.vmem [resolvable:$true] %s1904_s8 }
 0x45b   :  { %v1867_v30 = vrot.slane %v1836_v17, 7  ;;  %s2340_s9 = scalar_lea.vmem %s1905_s8, 256  ;;  %p2345_p3 = scmp.lt.s32.totalorder %s1905_s8, %s1905_s8 }
 0x45c   :  { %p2341_p2 = scmp.ne.s32.totalorder %s1905_s8, %s2340_s9  ;;  %p2346_p4 = scmp.lt.s32.totalorder %s2340_s9, %s2340_s9 }
 0x45d   :  { %v1868_v31 = vsel %vm427_vm2, %v1867_v30, %v1835_v29  ;;  %v1252_v2 = vpop.f32.mrb[20].mxu0  ;;  %v2759_v29 = vpop.eup %2294 }
 0x45e   :  { %v1032_v33 = vpop.f32.mrb[8].mxu1  ;;  %v2116_v34 = vpop.f32.mrb[21].mxu0  ;;  %v1791_v55 = vmul.f32 %v1760_v6, %v1252_v2  ;;  %p2347_p5 = por %p2346_p4, %p2345_p3 }
 0x45f   :  { %v1787_v35 = vmul.f32 %v1756_v32, %v1032_v33  ;;  %v2084_v36 = vpop.f32.mrb[9].mxu1  ;;  %v1255_v3 = vpop.f32.mrb[22].mxu0  ;;  %v1763_v34 = vrot.slane %v2759_v29, 2 }
 0x460   :  { %v1035_v38 = vpop.f32.mrb[10].mxu1  ;;  %v2117_v39 = vpop.f32.mrb[23].mxu0  ;;  %v1841_v11 = vmul.f32 %v1810_v61, %v1791_v55  ;;  %p2348_p6 = pnand %p2347_p5, %p2341_p2 }
 0x461   :  { %v1837_v40 = vmul.f32 %v1806_v37, %v1787_v35  ;;  %v2085_v41 = vpop.f32.mrb[11].mxu1  ;;  %v1813_v38 = vrot.slane %v2765_v13, 2 }
 0x462   :  { %v1877_v20 = vrot.slane %v1841_v11, 2  ;;  %v1762_v41 = vrot.slane %v2759_v29, 1 }
 0x463   :  { %v1869_v24 = vrot.slane %v1837_v40, 6 }
 0x465   :  { %v1870_v46 = vsel %vm429_vm3, %v1869_v24, %v1868_v31 }
 0x466   :  { %v1087_v9 = vpop.f32.mrb[12].mxu1 }
 0x467   :  { %v1788_v48 = vmul.f32 %v1757_v47, %v1087_v9  ;;  %v2092_v49 = vpop.f32.mrb[13].mxu1 }
 0x468   :  { %v1090_v52 = vpop.f32.mrb[14].mxu1  ;;  %v1765_v49 = vrot.slane %v2759_v29, 4 }
 0x469   :  { %v1838_v54 = vmul.f32 %v1807_v4, %v1788_v48  ;;  %v2093_v21 = vpop.f32.mrb[15].mxu1  ;;  %v1362_v56 = vpop.f32.mrb[24].mxu0 }
 0x46a   :  { %v2132_v57 = vpop.f32.mrb[25].mxu0  ;;  %v1793_v44 = vmul.f32 %v2759_v29, %v1362_v56 }
 0x46b   :  { %v1871_v58 = vrot.slane %v1838_v54, 5  ;;  %v1365_v59 = vpop.f32.mrb[26].mxu0  ;;  %v1815_v57 = vrot.slane %v2765_v13, 4 }
 0x46c   :  { %v2133_v25 = vpop.f32.mrb[27].mxu0  ;;  %v1843_v52 = vmul.f32 %v2765_v13, %v1793_v44  ;;  %v1764_v59 = vrot.slane %v2759_v29, 3 }
 0x46d   :  { %v1872_v5 = vsel %vm431_vm4, %v1871_v58, %v1870_v46 }
 0x46e   :  { %v1197_v0 = vpop.f32.mrb[16].mxu1  ;;  %v1874_v7 = vsel %vm433_vm5, %v1873_v60, %v1872_v5  ;;  %v1814_v60 = vrot.slane %v2765_v13, 3 }
 0x46f   :  { %v1790_v1 = vmul.f32 %v1759_v62, %v1197_v0  ;;  %v2108_v10 = vpop.f32.mrb[17].mxu1 }
 0x470   :  { %v1200_v12 = vpop.f32.mrb[18].mxu1 }
 0x471   :  { %v1840_v43 = vmul.f32 %v1809_v63, %v1790_v1  ;;  %v2109_v15 = vpop.f32.mrb[19].mxu1  ;;  %v1472_v16 = vpop.f32.mrb[28].mxu0  ;;  %v1767_v1 = vrot.slane %v2759_v29, 6 }
 0x472   :  { %v2148_v18 = vpop.f32.mrb[29].mxu0  ;;  %v1795_v3 = vmul.f32 %v1763_v34, %v1472_v16  ;;  %v1766_v16 = vrot.slane %v2759_v29, 5 }
 0x473   :  { %v1875_v19 = vrot.slane %v1840_v43, 3  ;;  %v1475_v8 = vpop.f32.mrb[30].mxu0  ;;  %v1817_v43 = vrot.slane %v2765_v13, 6  ;;  %v1816_v18 = vrot.slane %v2765_v13, 5 }
 0x474   :  { %v2149_v22 = vpop.f32.mrb[31].mxu0  ;;  %v1845_v47 = vmul.f32 %v1813_v38, %v1795_v3 }
 0x475   :  { %v1876_v23 = vsel %vm435_vm6, %v1875_v19, %v1874_v7 }
 0x476   :  { %v1307_v17 = vpop.f32.mrb[20].mxu1  ;;  %v1878_v26 = vsel %vm437_vm7, %v1877_v20, %v1876_v23  ;;  %v1883_v21 = vrot.slane %v1845_v47, 6 }
 0x477   :  { %v1792_v30 = vmul.f32 %v1761_v27, %v1307_v17  ;;  %v2124_v31 = vpop.f32.mrb[21].mxu1 }
 0x478   :  { %v1310_v32 = vpop.f32.mrb[22].mxu1 }
 0x479   :  { %v1842_v37 = vmul.f32 %v1811_v28, %v1792_v30  ;;  %v2125_v2 = vpop.f32.mrb[23].mxu1  ;;  %v1582_v33 = vpop.f32.mrb[32].mxu0  ;;  %v1768_v32 = vrot.slane %v2759_v29, 7 }
 0x47a   :  { %v2164_v35 = vpop.f32.mrb[33].mxu0  ;;  %v1797_v6 = vmul.f32 %v1765_v49, %v1582_v33 }
 0x47b   :  { %v1879_v14 = vrot.slane %v1842_v37, 1  ;;  %v1585_v36 = vpop.f32.mrb[34].mxu0  ;;  %v1818_v37 = vrot.slane %v2765_v13, 7 }
 0x47c   :  { %v2165_v39 = vpop.f32.mrb[35].mxu0  ;;  %v1847_v62 = vmul.f32 %v1815_v57, %v1797_v6 }
 0x47d   :  { %v1880_v40 = vsel %vm439_vm8, %v1879_v14, %v1878_v26 }
 0x47e   :  { %1897 = vst [vmem:[#allocation7] sm:$0xff] %v1880_v40  ;;  %v1417_v24 = vpop.f32.mrb[24].mxu1  ;;  %v1887_v11 = vrot.slane %v1847_v62, 4 }
 0x47f   :  { %v1794_v45 = vmul.f32 %v1762_v41, %v1417_v24  ;;  %v2140_v46 = vpop.f32.mrb[25].mxu1 }
 0x480   :  { %v1420_v4 = vpop.f32.mrb[26].mxu1 }
 0x481   :  { %v1844_v51 = vmul.f32 %v1812_v42, %v1794_v45  ;;  %v2141_v9 = vpop.f32.mrb[27].mxu1  ;;  %v1692_v48 = vpop.f32.mrb[36].mxu0 }
 0x482   :  { %v2180_v50 = vpop.f32.mrb[37].mxu0  ;;  %v1799_v12 = vmul.f32 %v1767_v1, %v1692_v48 }
 0x483   :  { %v1881_v53 = vrot.slane %v1844_v51, 7  ;;  %v1695_v54 = vpop.f32.mrb[38].mxu0 }
 0x484   :  { %v2181_v58 = vpop.f32.mrb[39].mxu0  ;;  %v1849_v23 = vmul.f32 %v1817_v43, %v1799_v12 }
 0x485   :  { %v1882_v56 = vsel %vm427_vm2, %v1881_v53, %v1843_v52 }
 0x486   :  { %v1527_v55 = vpop.f32.mrb[28].mxu1  ;;  %v1884_v61 = vsel %vm429_vm3, %v1883_v21, %v1882_v56  ;;  %v1891_v30 = vrot.slane %v1849_v23, 2 }
 0x487   :  { %v1796_v25 = vmul.f32 %v1764_v59, %v1527_v55  ;;  %v2156_v5 = vpop.f32.mrb[29].mxu1 }
 0x488   :  { %v1530_v63 = vpop.f32.mrb[30].mxu1 }
 0x489   :  { %v1846_v0 = vmul.f32 %v1814_v60, %v1796_v25  ;;  %v2157_v7 = vpop.f32.mrb[31].mxu1 }
 0x48b   :  { %v1885_v10 = vrot.slane %v1846_v0, 5 }
 0x48d   :  { %v1886_v15 = vsel %vm431_vm4, %v1885_v10, %v1884_v61 }
 0x48e   :  { %v1637_v19 = vpop.f32.mrb[32].mxu1  ;;  %v1888_v8 = vsel %vm433_vm5, %v1887_v11, %v1886_v15 }
 0x48f   :  { %v1798_v20 = vmul.f32 %v1766_v16, %v1637_v19  ;;  %v2172_v22 = vpop.f32.mrb[33].mxu1 }
 0x490   :  { %v1640_v27 = vpop.f32.mrb[34].mxu1 }
 0x491   :  { %v1848_v28 = vmul.f32 %v1816_v18, %v1798_v20  ;;  %v2173_v17 = vpop.f32.mrb[35].mxu1 }
 0x493   :  { %v1889_v26 = vrot.slane %v1848_v28, 3 }
 0x495   :  { %v1890_v31 = vsel %vm435_vm6, %v1889_v26, %v1888_v8 }
 0x496   :  { %v1747_v2 = vpop.f32.mrb[36].mxu1  ;;  %v1892_v33 = vsel %vm437_vm7, %v1891_v30, %v1890_v31 }
 0x497   :  { %v1800_v34 = vmul.f32 %v1768_v32, %v1747_v2  ;;  %v2188_v35 = vpop.f32.mrb[37].mxu1 }
 0x498   :  { %v1750_v14 = vpop.f32.mrb[38].mxu1 }
 0x499   :  { %v1850_v36 = vmul.f32 %v1818_v37, %v1800_v34  ;;  %v2189_v3 = vpop.f32.mrb[39].mxu1 }
 0x49b   :  { %v1893_v38 = vrot.slane %v1850_v36, 1 }
 0x49d   :  { %v1894_v39 = vsel %vm439_vm8, %v1893_v38, %v1892_v33 }
 0x49e   :  { %1898 = vst [vmem:[#allocation7 + $0x8] sm:$0xff] %v1894_v39 }
 0x49f   :  { %2351 = shalt.err (!%p2348_p6)
}
 0x4a0   :  { %s2352_s12 = scalar_lea.hbm %s2808_s6, 256 }
 0x4a1   :  { %p2353_p7 = scmp.ne.s32.totalorder %s2808_s6, %s2352_s12  ;;  %p2356_p8 = scmp.lt.u32.totalorder %s2352_s12, %s2808_s6 }
 0x4a3   :  { %p2358_p9 = pnand %p2356_p8, %p2353_p7 }
 0x4a5   :  { %2361 = shalt.err (!%p2358_p9)
}
 0x4a6   :  { %s2376_s17 = smov 128   ;;  %s2377_s18 = smov 8  }
 0x4a7   :  { %1910 = dma.vmem_to_hbm [thread:$0]  %s1905_s8, 256, %s2808_s6, [#allocation4], %s2376_s17, %s2376_s17, %s2377_s18  }
 0x4a8   :  { %2366 = dma.done.wait [#allocation4], 256  }
 0x4a9   :  { %2367 = vsyncadd [#allocation4], 4294967040 }
 0x4aa   :  { %1914 = vsyncpa [#allocation3], 1 }
 0x4ab   :  { %1915 = vsyncpa [#allocation6], 1 }
 0x4ac   :  { %1916 = vsyncpa [#allocation4], 1 }

</bundles_post_ra>
